<compile_context>
chip_gen: v6e
topology: v6e:2x2x1
jax: 0.10.0
libtpu: 0.0.40
codegen_flags: <defaults>
</compile_context>

<pallas_src>
import functools

import jax
import jax.numpy as jnp
from jax.experimental import pallas as pl
from jax.experimental.pallas import tpu as pltpu

EPS = 1e-5


def _conv3x3_band_blocks(w, W, C):
    """Lower a 3x3 stride-1 SAME conv (HWIO weights) to block-tridiagonal form over blocks of
    2 spatial rows (block lane layout l = r2*W*C + w*C + c, L = 2*W*C):
        y_blk[b] = x_blk[b-1] @ B_up + x_blk[b] @ B_mid + x_blk[b+1] @ B_dn
    with out-of-range neighbor blocks == 0 (SAME row padding).  Width padding is encoded by
    simply omitting out-of-range taps inside the blocks.  One-time wrapper-side prep."""
    L = 2 * W * C
    ci = jnp.arange(C)
    blocks = {-1: jnp.zeros((L, L), jnp.float32),
              0: jnp.zeros((L, L), jnp.float32),
              1: jnp.zeros((L, L), jnp.float32)}
    for r2o in (0, 1):                      # output row within the block
        for ki in range(3):                 # kernel row tap
            for delta in (-1, 0, 1):        # which neighbor block supplies the input row
                r2i = r2o + ki - 1 - 2 * delta
                if r2i not in (0, 1):
                    continue
                for kj in range(3):         # kernel col tap (in-bounds output cols only)
                    wo = jnp.arange(max(0, 1 - kj), min(W, W - kj + 1))
                    wi = wo + kj - 1
                    rows = (r2i * W + wi)[:, None, None] * C + ci[None, :, None]   # input lanes
                    cols = (r2o * W + wo)[:, None, None] * C + ci[None, None, :]   # output lanes
                    vals = jnp.broadcast_to(w[ki, kj][None], (wo.shape[0], C, C))
                    blocks[delta] = blocks[delta].at[rows, cols].add(vals)
    return blocks[-1], blocks[0], blocks[1]


def basic_block_kernel(x_ref, w_ref, sh_ref, bn_ref, out_ref, *, inv_m):
    """Fused BasicBlock forward.

    x_ref  : (M, 128) f32   activations, blocks of 2 spatial rows (also the residual identity)
    w_ref  : (7, 128, 128) bf16  [B1_up, B1_mid, B1_dn, B2_up, B2_mid, B2_dn, channel-projector]
    sh_ref : (2, M, M) f32  batch-boundary-aware block shift matrices [S_up, S_dn]
    bn_ref : (4, 128) f32   BN affine params pre-broadcast to lanes [g1, b1, g2, b2]
    out_ref: (M, 128) f32
    """
    f32 = jnp.float32
    x = x_ref[...]

    # Hoisted constant loads / upcasts (read once, not per BN call).
    b1u = w_ref[0].astype(f32)
    b1m = w_ref[1].astype(f32)
    b1d = w_ref[2].astype(f32)
    b2u = w_ref[3].astype(f32)
    b2m = w_ref[4].astype(f32)
    b2d = w_ref[5].astype(f32)
    pproj = w_ref[6].astype(f32)          # (128,128): lane -> same-channel-lanes projector
    s_up = sh_ref[0]                      # (M,M): row m -> row m-1 of same batch, else 0
    s_dn = sh_ref[1]                      # (M,M): row m -> row m+1 of same batch, else 0
    bnp = bn_ref[...]
    g1, be1, g2, be2 = bnp[0:1], bnp[1:2], bnp[2:3], bnp[3:4]

    def conv3x3(a, bu, bm, bd):
        # Block-tridiagonal 3x3 SAME conv; neighbor blocks come from (M,M) shift matmuls
        # (zero across batch / image-top / image-bottom boundaries by construction).
        up = jnp.dot(s_up, a, preferred_element_type=f32)
        dn = jnp.dot(s_dn, a, preferred_element_type=f32)
        return (jnp.dot(up, bu, preferred_element_type=f32)
                + jnp.dot(a, bm, preferred_element_type=f32)
                + jnp.dot(dn, bd, preferred_element_type=f32))

    def bn(y, gamma, beta):
        # Training-mode batch statistics.  Two-pass (mean-subtracted) variance for numerical
        # robustness; per-channel reduction over the strided lane layout is an MXU matmul
        # against the 0/1 projector.  All stats / FMA math in f32 on the VPU.
        mean = jnp.dot(jnp.sum(y, axis=0, keepdims=True), pproj,
                       preferred_element_type=f32) * inv_m           # (1,128) channel means
        yc = y - mean
        var = jnp.dot(jnp.sum(yc * yc, axis=0, keepdims=True), pproj,
                      preferred_element_type=f32) * inv_m            # (1,128) channel vars
        return yc * (gamma * jax.lax.rsqrt(var + EPS)) + beta

    y1 = jnp.maximum(bn(conv3x3(x, b1u, b1m, b1d), g1, be1), 0.0)
    y2 = jnp.maximum(bn(conv3x3(y1, b2u, b2m, b2d), g2, be2) + x, 0.0)
    out_ref[...] = y2.astype(out_ref.dtype)


def basic_block(x_nchw, w1, g1, b1, w2, g2, b2):
    """Wrapper: NCHW in / NCHW out, matching the PyTorch module's interface."""
    N, C, H, W = x_nchw.shape
    assert w1.shape[-1] == C and w2.shape[-1] == C, "residual add requires inplanes == planes"
    assert H % 2 == 0
    HB = H // 2
    L = 2 * W * C          # lane width per block (128 here)
    M = N * HB             # matmul M dimension (16 here)

    # Activations: NCHW -> NHWC -> (M, L) lane-dense blocks of 2 spatial rows (glue, outside).
    x_flat = (jnp.transpose(x_nchw, (0, 2, 3, 1))
              .reshape(N, HB, L).reshape(M, L).astype(jnp.float32))

    # One-time constant preprocessing (cacheable across calls in a real deployment).
    wb1 = _conv3x3_band_blocks(w1.astype(jnp.float32), W, C)
    wb2 = _conv3x3_band_blocks(w2.astype(jnp.float32), W, C)
    pproj = (jnp.arange(L)[:, None] % C == jnp.arange(L)[None, :] % C).astype(jnp.float32)
    weights = jnp.stack(list(wb1) + list(wb2) + [pproj]).astype(jnp.bfloat16)   # (7, L, L) bf16

    # Block shift matrices: neighbor block of the same batch, zero at batch/image boundaries.
    blk = jnp.arange(M)
    same_batch = (blk[:, None] // HB) == (blk[None, :] // HB)
    s_up = ((blk[None, :] == blk[:, None] - 1) & same_batch).astype(jnp.float32)
    s_dn = ((blk[None, :] == blk[:, None] + 1) & same_batch).astype(jnp.float32)
    shifts = jnp.stack([s_up, s_dn])                                            # (2, M, M) f32

    # BN affine params pre-broadcast to lane vectors (lane l -> channel l % C), packed once.
    lane_c = jnp.arange(L) % C
    bnp = jnp.stack([g1.astype(jnp.float32)[lane_c], b1.astype(jnp.float32)[lane_c],
                     g2.astype(jnp.float32)[lane_c], b2.astype(jnp.float32)[lane_c]])  # (4, L)

    kernel = functools.partial(basic_block_kernel, inv_m=1.0 / float(N * H * W))

    out_flat = pl.pallas_call(
        kernel,
        out_shape=jax.ShapeDtypeStruct((M, L), jnp.float32),
        grid=(1,),
        in_specs=[
            pl.BlockSpec((M, L), lambda i: (0, 0)),          # activations / residual
            pl.BlockSpec((7, L, L), lambda i: (0, 0, 0)),    # packed bf16 conv blocks + projector
            pl.BlockSpec((2, M, M), lambda i: (0, 0, 0)),    # packed shift matrices
            pl.BlockSpec((4, L), lambda i: (0, 0)),          # packed BN affine params
        ],
        out_specs=pl.BlockSpec((M, L), lambda i: (0, 0)),
        compiler_params=pltpu.CompilerParams(
            dimension_semantics=("arbitrary",),
            vmem_limit_bytes=16 * 1024 * 1024,
        ),
    )(x_flat, weights, shifts, bnp)

    return (jnp.transpose(out_flat.reshape(N, HB, 2, W, C).reshape(N, H, W, C), (0, 3, 1, 2))
            .astype(x_nchw.dtype))


def reference(x_nchw, w1, g1, b1, w2, g2, b2):
    """Plain-JAX reference (canonical BasicBlock forward) for validation."""
    x = jnp.transpose(x_nchw, (0, 2, 3, 1))

    def conv(y, w):
        return jax.lax.conv_general_dilated(
            y, w, window_strides=(1, 1), padding="SAME",
            dimension_numbers=("NHWC", "HWIO", "NHWC"))

    def bn(y, g, b):
        m = jnp.mean(y, axis=(0, 1, 2), keepdims=True)
        v = jnp.mean((y - m) ** 2, axis=(0, 1, 2), keepdims=True)
        return (y - m) * jax.lax.rsqrt(v + EPS) * g + b

    y = jax.nn.relu(bn(conv(x, w1), g1, b1))
    y = jax.nn.relu(bn(conv(y, w2), g2, b2) + x)
    return jnp.transpose(y, (0, 3, 1, 2))


if __name__ == "__main__":
    # Small shapes consistent with the module's forward: N=2, inplanes=planes=4, 16x16 spatial.
    N, C, H, W = 2, 4, 16, 16

    key = jax.random.PRNGKey(0)
    kx, kw1, kw2 = jax.random.split(key, 3)

    x = jax.random.normal(kx, (N, C, H, W), dtype=jnp.float32)
    # Conv weights (HWIO), made exactly bf16-representable so the kernel's bf16 weight shipping
    # is lossless and the tight f32 validation below stays meaningful.  BN: gamma=1, beta=0.
    w1 = (0.1 * jax.random.normal(kw1, (3, 3, C, C), jnp.float32)
          ).astype(jnp.bfloat16).astype(jnp.float32)
    w2 = (0.1 * jax.random.normal(kw2, (3, 3, C, C), jnp.float32)
          ).astype(jnp.bfloat16).astype(jnp.float32)
    g1 = jnp.ones((C,), jnp.float32)
    b1 = jnp.zeros((C,), jnp.float32)
    g2 = jnp.ones((C,), jnp.float32)
    b2 = jnp.zeros((C,), jnp.float32)

    out = basic_block(x, w1, g1, b1, w2, g2, b2)
    out = jax.block_until_ready(out)

    ref = jax.block_until_ready(reference(x, w1, g1, b1, w2, g2, b2))
    assert out.shape == (N, C, H, W)
    assert jnp.allclose(out, ref, atol=1e-4, rtol=1e-4), "mismatch vs JAX reference"

    print("KERNEL_OK")
</pallas_src>

<mosaic_0001>
module attributes {stable_mosaic.version = 11 : i64} {
  func.func @basic_block_kernel(%arg0: i32, %arg1: memref<16x128xf32, #tpu.memory_space<vmem>>, %arg2: memref<7x128x128xbf16, #tpu.memory_space<vmem>>, %arg3: memref<2x16x16xf32, #tpu.memory_space<vmem>>, %arg4: memref<4x128xf32, #tpu.memory_space<vmem>>, %arg5: memref<16x128xf32, #tpu.memory_space<vmem>>) attributes {dimension_semantics = [#tpu.dimension_semantics<arbitrary>], iteration_bounds = array<i64: 1>, scalar_prefetch = 0 : i64, scratch_operands = 0 : i64, tpu.core_type = #tpu.core_type<tc>, window_params = [{pipeline_mode = #tpu.pipeline_mode<synchronous>, transform_indices = @transform_0, window_bounds = array<i64: 16, 128>}, {pipeline_mode = #tpu.pipeline_mode<synchronous>, transform_indices = @transform_1, window_bounds = array<i64: 7, 128, 128>}, {pipeline_mode = #tpu.pipeline_mode<synchronous>, transform_indices = @transform_2, window_bounds = array<i64: 2, 16, 16>}, {pipeline_mode = #tpu.pipeline_mode<synchronous>, transform_indices = @transform_3, window_bounds = array<i64: 4, 128>}, {pipeline_mode = #tpu.pipeline_mode<synchronous>, transform_indices = @transform_4, window_bounds = array<i64: 16, 128>}]} {
    %c0 = arith.constant 0 : index
    %c0_0 = arith.constant 0 : index
    %0 = vector.load %arg1[%c0, %c0_0] : memref<16x128xf32, #tpu.memory_space<vmem>>, vector<16x128xf32>
    %c0_1 = arith.constant 0 : index
    %c0_2 = arith.constant 0 : index
    %c0_3 = arith.constant 0 : index
    %1 = vector.load %arg2[%c0_1, %c0_2, %c0_3] : memref<7x128x128xbf16, #tpu.memory_space<vmem>>, vector<1x128x128xbf16>
    %2 = vector.shape_cast %1 : vector<1x128x128xbf16> to vector<128x128xbf16>
    %3 = arith.extf %2 : vector<128x128xbf16> to vector<128x128xf32>
    %c1 = arith.constant 1 : index
    %c0_4 = arith.constant 0 : index
    %c0_5 = arith.constant 0 : index
    %4 = vector.load %arg2[%c1, %c0_4, %c0_5] : memref<7x128x128xbf16, #tpu.memory_space<vmem>>, vector<1x128x128xbf16>
    %5 = vector.shape_cast %4 : vector<1x128x128xbf16> to vector<128x128xbf16>
    %6 = arith.extf %5 : vector<128x128xbf16> to vector<128x128xf32>
    %c2 = arith.constant 2 : index
    %c0_6 = arith.constant 0 : index
    %c0_7 = arith.constant 0 : index
    %7 = vector.load %arg2[%c2, %c0_6, %c0_7] : memref<7x128x128xbf16, #tpu.memory_space<vmem>>, vector<1x128x128xbf16>
    %8 = vector.shape_cast %7 : vector<1x128x128xbf16> to vector<128x128xbf16>
    %9 = arith.extf %8 : vector<128x128xbf16> to vector<128x128xf32>
    %c3 = arith.constant 3 : index
    %c0_8 = arith.constant 0 : index
    %c0_9 = arith.constant 0 : index
    %10 = vector.load %arg2[%c3, %c0_8, %c0_9] : memref<7x128x128xbf16, #tpu.memory_space<vmem>>, vector<1x128x128xbf16>
    %11 = vector.shape_cast %10 : vector<1x128x128xbf16> to vector<128x128xbf16>
    %12 = arith.extf %11 : vector<128x128xbf16> to vector<128x128xf32>
    %c4 = arith.constant 4 : index
    %c0_10 = arith.constant 0 : index
    %c0_11 = arith.constant 0 : index
    %13 = vector.load %arg2[%c4, %c0_10, %c0_11] : memref<7x128x128xbf16, #tpu.memory_space<vmem>>, vector<1x128x128xbf16>
    %14 = vector.shape_cast %13 : vector<1x128x128xbf16> to vector<128x128xbf16>
    %15 = arith.extf %14 : vector<128x128xbf16> to vector<128x128xf32>
    %c5 = arith.constant 5 : index
    %c0_12 = arith.constant 0 : index
    %c0_13 = arith.constant 0 : index
    %16 = vector.load %arg2[%c5, %c0_12, %c0_13] : memref<7x128x128xbf16, #tpu.memory_space<vmem>>, vector<1x128x128xbf16>
    %17 = vector.shape_cast %16 : vector<1x128x128xbf16> to vector<128x128xbf16>
    %18 = arith.extf %17 : vector<128x128xbf16> to vector<128x128xf32>
    %c6 = arith.constant 6 : index
    %c0_14 = arith.constant 0 : index
    %c0_15 = arith.constant 0 : index
    %19 = vector.load %arg2[%c6, %c0_14, %c0_15] : memref<7x128x128xbf16, #tpu.memory_space<vmem>>, vector<1x128x128xbf16>
    %20 = vector.shape_cast %19 : vector<1x128x128xbf16> to vector<128x128xbf16>
    %21 = arith.extf %20 : vector<128x128xbf16> to vector<128x128xf32>
    %c0_16 = arith.constant 0 : index
    %c0_17 = arith.constant 0 : index
    %c0_18 = arith.constant 0 : index
    %22 = vector.load %arg3[%c0_16, %c0_17, %c0_18] : memref<2x16x16xf32, #tpu.memory_space<vmem>>, vector<1x16x16xf32>
    %23 = vector.shape_cast %22 : vector<1x16x16xf32> to vector<16x16xf32>
    %c1_19 = arith.constant 1 : index
    %c0_20 = arith.constant 0 : index
    %c0_21 = arith.constant 0 : index
    %24 = vector.load %arg3[%c1_19, %c0_20, %c0_21] : memref<2x16x16xf32, #tpu.memory_space<vmem>>, vector<1x16x16xf32>
    %25 = vector.shape_cast %24 : vector<1x16x16xf32> to vector<16x16xf32>
    %c0_22 = arith.constant 0 : index
    %c0_23 = arith.constant 0 : index
    %26 = vector.load %arg4[%c0_22, %c0_23] : memref<4x128xf32, #tpu.memory_space<vmem>>, vector<4x128xf32>
    %27 = vector.extract_strided_slice %26 {offsets = [0, 0], sizes = [1, 128], strides = [1, 1]} : vector<4x128xf32> to vector<1x128xf32>
    %28 = vector.extract_strided_slice %26 {offsets = [1, 0], sizes = [1, 128], strides = [1, 1]} : vector<4x128xf32> to vector<1x128xf32>
    %29 = vector.extract_strided_slice %26 {offsets = [2, 0], sizes = [1, 128], strides = [1, 1]} : vector<4x128xf32> to vector<1x128xf32>
    %30 = vector.extract_strided_slice %26 {offsets = [3, 0], sizes = [1, 128], strides = [1, 1]} : vector<4x128xf32> to vector<1x128xf32>
    %cst = arith.constant dense<0.000000e+00> : vector<16x128xf32>
    %31 = tpu.matmul %23, %0, %cst {dimension_numbers = #tpu.dot_dimension_numbers<[1], [0], [0], [1], [0, 0, 1, 1], [], []>} : vector<16x16xf32>, vector<16x128xf32>, vector<16x128xf32> -> vector<16x128xf32>
    %cst_24 = arith.constant dense<0.000000e+00> : vector<16x128xf32>
    %32 = tpu.matmul %25, %0, %cst_24 {dimension_numbers = #tpu.dot_dimension_numbers<[1], [0], [0], [1], [0, 0, 1, 1], [], []>} : vector<16x16xf32>, vector<16x128xf32>, vector<16x128xf32> -> vector<16x128xf32>
    %cst_25 = arith.constant dense<0.000000e+00> : vector<16x128xf32>
    %33 = tpu.matmul %31, %3, %cst_25 {dimension_numbers = #tpu.dot_dimension_numbers<[1], [0], [0], [1], [0, 0, 1, 1], [], []>} : vector<16x128xf32>, vector<128x128xf32>, vector<16x128xf32> -> vector<16x128xf32>
    %cst_26 = arith.constant dense<0.000000e+00> : vector<16x128xf32>
    %34 = tpu.matmul %0, %6, %cst_26 {dimension_numbers = #tpu.dot_dimension_numbers<[1], [0], [0], [1], [0, 0, 1, 1], [], []>} : vector<16x128xf32>, vector<128x128xf32>, vector<16x128xf32> -> vector<16x128xf32>
    %35 = arith.addf %33, %34 : vector<16x128xf32>
    %cst_27 = arith.constant dense<0.000000e+00> : vector<16x128xf32>
    %36 = tpu.matmul %32, %9, %cst_27 {dimension_numbers = #tpu.dot_dimension_numbers<[1], [0], [0], [1], [0, 0, 1, 1], [], []>} : vector<16x128xf32>, vector<128x128xf32>, vector<16x128xf32> -> vector<16x128xf32>
    %37 = arith.addf %35, %36 : vector<16x128xf32>
    %cst_28 = arith.constant dense<0.000000e+00> : vector<128xf32>
    %38 = vector.multi_reduction <add>, %37, %cst_28 [0] : vector<16x128xf32> to vector<128xf32>
    %39 = vector.shape_cast %38 : vector<128xf32> to vector<1x128xf32>
    %cst_29 = arith.constant dense<0.000000e+00> : vector<1x128xf32>
    %40 = tpu.matmul %39, %21, %cst_29 {dimension_numbers = #tpu.dot_dimension_numbers<[1], [0], [0], [1], [0, 0, 1, 1], [], []>} : vector<1x128xf32>, vector<128x128xf32>, vector<1x128xf32> -> vector<1x128xf32>
    %cst_30 = arith.constant 0.001953125 : f32
    %41 = vector.broadcast %cst_30 : f32 to vector<1x128xf32>
    %42 = arith.mulf %40, %41 : vector<1x128xf32>
    %43 = vector.broadcast %42 : vector<1x128xf32> to vector<16x128xf32>
    %44 = arith.subf %37, %43 : vector<16x128xf32>
    %45 = arith.mulf %44, %44 : vector<16x128xf32>
    %cst_31 = arith.constant dense<0.000000e+00> : vector<128xf32>
    %46 = vector.multi_reduction <add>, %45, %cst_31 [0] : vector<16x128xf32> to vector<128xf32>
    %47 = vector.shape_cast %46 : vector<128xf32> to vector<1x128xf32>
    %cst_32 = arith.constant dense<0.000000e+00> : vector<1x128xf32>
    %48 = tpu.matmul %47, %21, %cst_32 {dimension_numbers = #tpu.dot_dimension_numbers<[1], [0], [0], [1], [0, 0, 1, 1], [], []>} : vector<1x128xf32>, vector<128x128xf32>, vector<1x128xf32> -> vector<1x128xf32>
    %cst_33 = arith.constant 0.001953125 : f32
    %49 = vector.broadcast %cst_33 : f32 to vector<1x128xf32>
    %50 = arith.mulf %48, %49 : vector<1x128xf32>
    %cst_34 = arith.constant 9.99999974E-6 : f32
    %51 = vector.broadcast %cst_34 : f32 to vector<1x128xf32>
    %52 = arith.addf %50, %51 : vector<1x128xf32>
    %53 = math.rsqrt %52 : vector<1x128xf32>
    %54 = arith.mulf %27, %53 : vector<1x128xf32>
    %55 = vector.broadcast %54 : vector<1x128xf32> to vector<16x128xf32>
    %56 = arith.mulf %44, %55 : vector<16x128xf32>
    %57 = vector.broadcast %28 : vector<1x128xf32> to vector<16x128xf32>
    %58 = arith.addf %56, %57 : vector<16x128xf32>
    %cst_35 = arith.constant 0.000000e+00 : f32
    %59 = vector.broadcast %cst_35 : f32 to vector<16x128xf32>
    %60 = arith.maximumf %58, %59 : vector<16x128xf32>
    %cst_36 = arith.constant dense<0.000000e+00> : vector<16x128xf32>
    %61 = tpu.matmul %23, %60, %cst_36 {dimension_numbers = #tpu.dot_dimension_numbers<[1], [0], [0], [1], [0, 0, 1, 1], [], []>} : vector<16x16xf32>, vector<16x128xf32>, vector<16x128xf32> -> vector<16x128xf32>
    %cst_37 = arith.constant dense<0.000000e+00> : vector<16x128xf32>
    %62 = tpu.matmul %25, %60, %cst_37 {dimension_numbers = #tpu.dot_dimension_numbers<[1], [0], [0], [1], [0, 0, 1, 1], [], []>} : vector<16x16xf32>, vector<16x128xf32>, vector<16x128xf32> -> vector<16x128xf32>
    %cst_38 = arith.constant dense<0.000000e+00> : vector<16x128xf32>
    %63 = tpu.matmul %61, %12, %cst_38 {dimension_numbers = #tpu.dot_dimension_numbers<[1], [0], [0], [1], [0, 0, 1, 1], [], []>} : vector<16x128xf32>, vector<128x128xf32>, vector<16x128xf32> -> vector<16x128xf32>
    %cst_39 = arith.constant dense<0.000000e+00> : vector<16x128xf32>
    %64 = tpu.matmul %60, %15, %cst_39 {dimension_numbers = #tpu.dot_dimension_numbers<[1], [0], [0], [1], [0, 0, 1, 1], [], []>} : vector<16x128xf32>, vector<128x128xf32>, vector<16x128xf32> -> vector<16x128xf32>
    %65 = arith.addf %63, %64 : vector<16x128xf32>
    %cst_40 = arith.constant dense<0.000000e+00> : vector<16x128xf32>
    %66 = tpu.matmul %62, %18, %cst_40 {dimension_numbers = #tpu.dot_dimension_numbers<[1], [0], [0], [1], [0, 0, 1, 1], [], []>} : vector<16x128xf32>, vector<128x128xf32>, vector<16x128xf32> -> vector<16x128xf32>
    %67 = arith.addf %65, %66 : vector<16x128xf32>
    %cst_41 = arith.constant dense<0.000000e+00> : vector<128xf32>
    %68 = vector.multi_reduction <add>, %67, %cst_41 [0] : vector<16x128xf32> to vector<128xf32>
    %69 = vector.shape_cast %68 : vector<128xf32> to vector<1x128xf32>
    %cst_42 = arith.constant dense<0.000000e+00> : vector<1x128xf32>
    %70 = tpu.matmul %69, %21, %cst_42 {dimension_numbers = #tpu.dot_dimension_numbers<[1], [0], [0], [1], [0, 0, 1, 1], [], []>} : vector<1x128xf32>, vector<128x128xf32>, vector<1x128xf32> -> vector<1x128xf32>
    %cst_43 = arith.constant 0.001953125 : f32
    %71 = vector.broadcast %cst_43 : f32 to vector<1x128xf32>
    %72 = arith.mulf %70, %71 : vector<1x128xf32>
    %73 = vector.broadcast %72 : vector<1x128xf32> to vector<16x128xf32>
    %74 = arith.subf %67, %73 : vector<16x128xf32>
    %75 = arith.mulf %74, %74 : vector<16x128xf32>
    %cst_44 = arith.constant dense<0.000000e+00> : vector<128xf32>
    %76 = vector.multi_reduction <add>, %75, %cst_44 [0] : vector<16x128xf32> to vector<128xf32>
    %77 = vector.shape_cast %76 : vector<128xf32> to vector<1x128xf32>
    %cst_45 = arith.constant dense<0.000000e+00> : vector<1x128xf32>
    %78 = tpu.matmul %77, %21, %cst_45 {dimension_numbers = #tpu.dot_dimension_numbers<[1], [0], [0], [1], [0, 0, 1, 1], [], []>} : vector<1x128xf32>, vector<128x128xf32>, vector<1x128xf32> -> vector<1x128xf32>
    %cst_46 = arith.constant 0.001953125 : f32
    %79 = vector.broadcast %cst_46 : f32 to vector<1x128xf32>
    %80 = arith.mulf %78, %79 : vector<1x128xf32>
    %cst_47 = arith.constant 9.99999974E-6 : f32
    %81 = vector.broadcast %cst_47 : f32 to vector<1x128xf32>
    %82 = arith.addf %80, %81 : vector<1x128xf32>
    %83 = math.rsqrt %82 : vector<1x128xf32>
    %84 = arith.mulf %29, %83 : vector<1x128xf32>
    %85 = vector.broadcast %84 : vector<1x128xf32> to vector<16x128xf32>
    %86 = arith.mulf %74, %85 : vector<16x128xf32>
    %87 = vector.broadcast %30 : vector<1x128xf32> to vector<16x128xf32>
    %88 = arith.addf %86, %87 : vector<16x128xf32>
    %89 = arith.addf %88, %0 : vector<16x128xf32>
    %cst_48 = arith.constant 0.000000e+00 : f32
    %90 = vector.broadcast %cst_48 : f32 to vector<16x128xf32>
    %91 = arith.maximumf %89, %90 : vector<16x128xf32>
    %c0_49 = arith.constant 0 : index
    %c0_50 = arith.constant 0 : index
    %92 = vector.load %arg5[%c0_49, %c0_50] : memref<16x128xf32, #tpu.memory_space<vmem>>, vector<16x128xf32>
    tpu.vector_store %arg5[%c0_49, %c0_50], %91 {strides = array<i32>} : memref<16x128xf32, #tpu.memory_space<vmem>>, vector<16x128xf32>,
    return
  }
  func.func @transform_0(%arg0: i32) -> (i32, i32) {
    %c0_i32 = arith.constant 0 : i32
    %c0_i32_0 = arith.constant 0 : i32
    %c0_i32_1 = arith.constant 0 : i32
    return %c0_i32, %c0_i32_0 : i32, i32
  }
  func.func @transform_1(%arg0: i32) -> (i32, i32, i32) {
    %c0_i32 = arith.constant 0 : i32
    %c0_i32_0 = arith.constant 0 : i32
    %c0_i32_1 = arith.constant 0 : i32
    %c0_i32_2 = arith.constant 0 : i32
    return %c0_i32, %c0_i32_0, %c0_i32_1 : i32, i32, i32
  }
  func.func @transform_2(%arg0: i32) -> (i32, i32, i32) {
    %c0_i32 = arith.constant 0 : i32
    %c0_i32_0 = arith.constant 0 : i32
    %c0_i32_1 = arith.constant 0 : i32
    %c0_i32_2 = arith.constant 0 : i32
    return %c0_i32, %c0_i32_0, %c0_i32_1 : i32, i32, i32
  }
  func.func @transform_3(%arg0: i32) -> (i32, i32) {
    %c0_i32 = arith.constant 0 : i32
    %c0_i32_0 = arith.constant 0 : i32
    %c0_i32_1 = arith.constant 0 : i32
    return %c0_i32, %c0_i32_0 : i32, i32
  }
  func.func @transform_4(%arg0: i32) -> (i32, i32) {
    %c0_i32 = arith.constant 0 : i32
    %c0_i32_0 = arith.constant 0 : i32
    %c0_i32_1 = arith.constant 0 : i32
    return %c0_i32, %c0_i32_0 : i32, i32
  }
}

</mosaic_0001>

<bundles_post_ra>
// kernel: tpu_custom_call.1
= control target key start
LH: loop header
LB: loop body
LE: loop exit
PB: predicated region body
PF: predicated region fallthrough
CT: control target
= control target key end

     0   :  { %9 = vsyncpa [#allocation3], 0  ;;  %s2696_s0 = inlined_call_operand.hbm [shape: f32[16,128], index: 0, kind: input, shape index: {}]   ;;  %s2697_s1 = inlined_call_operand.hbm [shape: bf16[7,128,128], index: 1, kind: input, shape index: {}]   ;;  %s2698_s2 = inlined_call_operand.hbm [shape: f32[2,16,16], index: 2, kind: input, shape index: {}]   ;;  %s2699_s3 = inlined_call_operand.vmem [shape: f32[4,128], index: 3, kind: input, shape index: {}]   ;;  %s2700_s4 = inlined_call_operand.hbm [shape: f32[16,128], index: 4, kind: output, shape index: {}]  }
   0x1   :  { %10 = vsyncpa [#allocation6], 0 }
   0x2   :  { %11 = vsyncpa [#allocation4], 0  ;;  %s2404_s15 = smov [#allocation5]  }
   0x3   :  { %s29_s16 = sshll.u32 %s2404_s15, 4  ;;  %s30_s16 = int_to_ptr.vmem [resolvable:$true] %s29_s16 }
   0x4   :  { %s2326_s17 = scalar_lea.vmem %s30_s16, 7168  ;;  %p2331_p1 = scmp.lt.s32.totalorder %s30_s16, %s30_s16 }
   0x5   :  { %p2327_p0 = scmp.ne.s32.totalorder %s30_s16, %s2326_s17  ;;  %p2332_p2 = scmp.lt.s32.totalorder %s2326_s17, %s2326_s17 }
   0x7   :  { %p2333_p3 = por %p2332_p2, %p2331_p1 }
   0x9   :  { %p2334_p4 = pnand %p2333_p3, %p2327_p0 }
   0xb   :  { %2337 = shalt.err (!%p2334_p4)
}
   0xc   :  { %s2405_s18 = smov 64   ;;  %s2406_s19 = smov 4  }
   0xd   :  { %35 = dma.hbm_to_vmem [thread:$0]  %s2697_s1, 7168, %s30_s16, [#allocation6], %s2405_s18, %s2405_s18, %s2406_s19  }
   0xe   :  { %s2407_s22 = smov [#allocation2]  }
   0xf   :  { %s17_s23 = sshll.u32 %s2407_s22, 4  ;;  %s18_s23 = int_to_ptr.vmem [resolvable:$true] %s17_s23 }
  0x10   :  { %s2346_s24 = scalar_lea.vmem %s18_s23, 256  ;;  %p2351_p6 = scmp.lt.s32.totalorder %s18_s23, %s18_s23 }
  0x11   :  { %p2347_p5 = scmp.ne.s32.totalorder %s18_s23, %s2346_s24  ;;  %p2352_p7 = scmp.lt.s32.totalorder %s2346_s24, %s2346_s24 }
  0x13   :  { %p2353_p8 = por %p2352_p7, %p2351_p6 }
  0x15   :  { %p2354_p9 = pnand %p2353_p8, %p2347_p5 }
  0x17   :  { %2357 = shalt.err (!%p2354_p9)
}
  0x18   :  { %s2408_s25 = smov 128   ;;  %s2409_s26 = smov 8  }
  0x19   :  { %23 = dma.hbm_to_vmem [thread:$0]  %s2696_s0, 256, %s18_s23, [#allocation3], %s2408_s25, %s2408_s25, %s2409_s26  }
  0x1a   :  { %s2410_s1 = smov [#allocation7]  }
  0x1b   :  { %s41_s29 = sshll.u32 %s2410_s1, 4  ;;  %s42_s29 = int_to_ptr.vmem [resolvable:$true] %s41_s29 }
  0x1c   :  { %s2366_s30 = scalar_lea.vmem %s42_s29, 512  ;;  %p2371_p11 = scmp.lt.s32.totalorder %s42_s29, %s42_s29 }
  0x1d   :  { %p2367_p10 = scmp.ne.s32.totalorder %s42_s29, %s2366_s30  ;;  %p2372_p12 = scmp.lt.s32.totalorder %s2366_s30, %s2366_s30 }
  0x1f   :  { %p2373_p13 = por %p2372_p12, %p2371_p11 }
  0x21   :  { %p2374_p0 = pnand %p2373_p13, %p2367_p10 }
  0x23   :  { %2377 = shalt.err (!%p2374_p0)
}
  0x24   :  { %47 = dma.hbm_to_vmem [thread:$0]  %s2698_s2, 512, %s42_s29, [#allocation6], %s2408_s25, %s2408_s25, %s2409_s26  }
  0x25   :  { %2398 = dma.done.wait [#allocation3], 256  }
  0x26   :  { %2399 = vsyncadd [#allocation3], 4294967040 }
  0x27   :  { %2400 = dma.done.wait [#allocation6], 7680  }
  0x28   :  { %2401 = vsyncadd [#allocation6], 4294959616  ;;  %vm297_vm0 = vcmask 130048   ;;  %v2454_v0 = vld [vmem:[#allocation2 + $0x8] sm:$0xff]  ;;  %v59_v1 = vld [vmem:[#allocation2] sm:$0xff]  ;;  %vm2412_vm1 = vmmov 0  }
  0x29   :  { %v2456_v2 = vld [vmem:[#allocation7] sm:$0xff]  ;;  %1924 = vmatprep.subr.mxu0 %v2454_v0  ;;  %v2462_v3 = vld [vmem:[#allocation7 + $0x8] sm:$0xff]  ;;  %v1696_v4 = vld [vmem:[#allocation5 + $0x78] sm:$0xff]  }
  0x2a   :  { %1928 = vmatprep.mubr.msk.f32.mxu0 %vm297_vm0, %v2456_v2  ;;  %1925 = vmatpush3.msra.mxu0 %v2454_v0  ;;  %v2464_v5 = vld [vmem:[#allocation7 + $0x10] sm:$0xff]  ;;  %v1689_v6 = vld [vmem:[#allocation5 + $0x38] sm:$0xff]   ;;  %v1522_v7 = vunpack.c.h.bf16 %v1696_v4  ;;  %v1521_v10 = vunpack.c.l.bf16 %v1696_v4  ;;  %v1694_v15 = vld [vmem:[#allocation5 + $0x68] sm:$0xff]  }
  0x2b   :  { %1926 = vmatprep.subr.mxu0 %v59_v1  ;;  %v2472_v8 = vld [vmem:[#allocation7 + $0x18] sm:$0xff]  ;;  %v1695_v9 = vld [vmem:[#allocation5 + $0x70] sm:$0xff]   ;;  %v1490_v11 = vunpack.c.h.bf16 %v1689_v6  ;;  %v1489_v14 = vunpack.c.l.bf16 %v1689_v6  ;;  %v1687_v18 = vld [vmem:[#allocation5 + $0x28] sm:$0xff]   ;;  %v1514_v19 = vunpack.c.h.bf16 %v1694_v15  ;;  %v1513_v22 = vunpack.c.l.bf16 %v1694_v15 }
  0x2c   :  { %1927 = vmatpush3.msra.mxu0 %v59_v1  ;;  %v1688_v12 = vld [vmem:[#allocation5 + $0x30] sm:$0xff]   ;;  %v1518_v13 = vunpack.c.h.bf16 %v1695_v9  ;;  %v1517_v16 = vunpack.c.l.bf16 %v1695_v9  ;;  %v1693_v21 = vld [vmem:[#allocation5 + $0x60] sm:$0xff]   ;;  %v1482_v23 = vunpack.c.h.bf16 %v1687_v18  ;;  %v1481_v26 = vunpack.c.l.bf16 %v1687_v18  ;;  %v1692_v27 = vld [vmem:[#allocation5 + $0x58] sm:$0xff]  }
  0x2d   :  { %1929 = vmatmul.mubr.msk.f32.vlgmr.msra.gmra.mxu0 %vm297_vm0, %v2462_v3  ;;  %1931 = vmatprep.subr.mxu0 %v2454_v0  ;;  %v1486_v17 = vunpack.c.h.bf16 %v1688_v12  ;;  %v1485_v20 = vunpack.c.l.bf16 %v1688_v12  ;;  %v1686_v24 = vld [vmem:[#allocation5 + $0x20] sm:$0xff]   ;;  %v1510_v25 = vunpack.c.h.bf16 %v1693_v21  ;;  %v1509_v28 = vunpack.c.l.bf16 %v1693_v21  ;;  %v1685_v30 = vld [vmem:[#allocation5 + $0x18] sm:$0xff]   ;;  %v1691_v33 = vld [vmem:[#allocation5 + $0x50] sm:$0xff]  }
  0x2e   :  { %1932 = vmatpush3.msra.mxu0 %v2454_v0  ;;  %1935 = vmatprep.mubr.msk.f32.mxu0 %vm297_vm0, %v2464_v5  ;;  %v1478_v29 = vunpack.c.h.bf16 %v1686_v24  ;;  %v1506_v31 = vunpack.c.h.bf16 %v1692_v27  ;;  %v1477_v32 = vunpack.c.l.bf16 %v1686_v24  ;;  %v1505_v34 = vunpack.c.l.bf16 %v1692_v27  ;;  %v1684_v36 = vld [vmem:[#allocation5 + $0x10] sm:$0xff]   ;;  %v1690_v39 = vld [vmem:[#allocation5 + $0x48] sm:$0xff]   ;;  %v1492_v45 = vld [vmem:[#allocation5 + $0x40] sm:$0xff]  }
  0x2f   :  { %1933 = vmatprep.subr.mxu0 %v59_v1  ;;  %1973 = vmatprep.subr.mxu1 %v1490_v11  ;;  %v1474_v35 = vunpack.c.h.bf16 %v1685_v30  ;;  %v1502_v37 = vunpack.c.h.bf16 %v1691_v33  ;;  %v1473_v38 = vunpack.c.l.bf16 %v1685_v30  ;;  %v1501_v40 = vunpack.c.l.bf16 %v1691_v33  ;;  %v1683_v42 = vld [vmem:[#allocation5 + $0x8] sm:$0xff]   ;;  %v1703_v50 = vld [vmem:[#allocation5 + $0xb8] sm:$0xff]   ;;  %v1702_v53 = vld [vmem:[#allocation5 + $0xb0] sm:$0xff]  }
  0x30   :  { %1934 = vmatpush3.msra.mxu0 %v59_v1  ;;  %1974 = vmatpush3.msra.mxu1 %v1490_v11  ;;  %v1470_v41 = vunpack.c.h.bf16 %v1684_v36  ;;  %v1498_v43 = vunpack.c.h.bf16 %v1690_v39  ;;  %v1469_v44 = vunpack.c.l.bf16 %v1684_v36  ;;  %v1497_v46 = vunpack.c.l.bf16 %v1690_v39  ;;  %v1701_v56 = vld [vmem:[#allocation5 + $0xa8] sm:$0xff]   ;;  %v1700_v59 = vld [vmem:[#allocation5 + $0xa0] sm:$0xff]   ;;  %v1699_v62 = vld [vmem:[#allocation5 + $0x98] sm:$0xff]  }
  0x31   :  { %1936 = vmatmul.mubr.msk.f32.vlgmr.msra.gmra.mxu0 %vm297_vm0, %v2472_v8  ;;  %1938 = vmatprep.subr.mxu0 %v1522_v7  ;;  %v1466_v47 = vunpack.c.h.bf16 %v1683_v42  ;;  %v1494_v48 = vunpack.c.h.bf16 %v1492_v45  ;;  %v1465_v49 = vunpack.c.l.bf16 %v1683_v42  ;;  %v1493_v51 = vunpack.c.l.bf16 %v1492_v45  ;;  %v1460_v9 = vld [vmem:[#allocation5] sm:$0xff]  }
  0x32   :  { %1939 = vmatpush3.msra.mxu0 %v1522_v7  ;;  %1970 = vmatprep.mubr.f32.mxu0 %v59_v1  ;;  %v1554_v52 = vunpack.c.h.bf16 %v1703_v50  ;;  %v1553_v54 = vunpack.c.l.bf16 %v1703_v50  ;;  %v1550_v55 = vunpack.c.h.bf16 %v1702_v53  ;;  %v1549_v57 = vunpack.c.l.bf16 %v1702_v53  ;;  %v1698_v1 = vld [vmem:[#allocation5 + $0x90] sm:$0xff]   ;;  %v1524_v15 = vld [vmem:[#allocation5 + $0x80] sm:$0xff]  }
  0x33   :  { %1940 = vmatprep.subr.mxu0 %v1521_v10  ;;  %1975 = vmatprep.subr.mxu1 %v1489_v14  ;;  %v1546_v58 = vunpack.c.h.bf16 %v1701_v56  ;;  %v1545_v60 = vunpack.c.l.bf16 %v1701_v56  ;;  %v1542_v61 = vunpack.c.h.bf16 %v1700_v59  ;;  %v1541_v63 = vunpack.c.l.bf16 %v1700_v59 }
  0x34   :  { %1941 = vmatpush3.msra.mxu0 %v1521_v10  ;;  %1976 = vmatpush3.msra.mxu1 %v1489_v14  ;;  %v1537_v4 = vunpack.c.l.bf16 %v1699_v62  ;;  %v1534_v6 = vunpack.c.h.bf16 %v1698_v1  ;;  %v1533_v7 = vunpack.c.l.bf16 %v1698_v1  ;;  %v1697_v10 = vld [vmem:[#allocation5 + $0x88] sm:$0xff]   ;;  %v1462_v11 = vunpack.c.h.bf16 %v1460_v9 }
  0x35   :  { %1942 = vmatprep.subr.mxu0 %v1518_v13  ;;  %1977 = vmatprep.subr.mxu1 %v1486_v17  ;;  %v1530_v12 = vunpack.c.h.bf16 %v1697_v10  ;;  %v1529_v14 = vunpack.c.l.bf16 %v1697_v10  ;;  %v2411_v18 = vmov 0.0  }
  0x36   :  { %1943 = vmatpush3.msra.mxu0 %v1518_v13  ;;  %1978 = vmatpush3.msra.mxu1 %v1486_v17  ;;  %v1461_v13 = vunpack.c.l.bf16 %v1460_v9  ;;  %v1525_v17 = vunpack.c.l.bf16 %v1524_v15 }
  0x37   :  { %1944 = vmatprep.subr.mxu0 %v1517_v16  ;;  %1979 = vmatprep.subr.mxu1 %v1485_v20 }
  0x38   :  { %1945 = vmatpush3.msra.mxu0 %v1517_v16  ;;  %1980 = vmatpush3.msra.mxu1 %v1485_v20  ;;  %v1526_v16 = vunpack.c.h.bf16 %v1524_v15 }
  0x39   :  { %1946 = vmatprep.subr.mxu0 %v1514_v19  ;;  %1981 = vmatprep.subr.mxu1 %v1482_v23 }
  0x3a   :  { %1947 = vmatpush3.msra.mxu0 %v1514_v19  ;;  %1982 = vmatpush3.msra.mxu1 %v1482_v23  ;;  %v1731_v19 = vld [vmem:[#allocation5 + $0x1b8] sm:$0xff]   ;;  %v1730_v23 = vld [vmem:[#allocation5 + $0x1b0] sm:$0xff]  }
  0x3b   :  { %1948 = vmatprep.subr.mxu0 %v1513_v22  ;;  %1983 = vmatprep.subr.mxu1 %v1481_v26  ;;  %v2479_v21 = vunpack.c.h.bf16 %v1731_v19  ;;  %v2481_v24 = vunpack.c.l.bf16 %v1731_v19 }
  0x3c   :  { %1949 = vmatpush3.msra.mxu0 %v1513_v22  ;;  %1984 = vmatpush3.msra.mxu1 %v1481_v26  ;;  %v2484_v26 = vunpack.c.h.bf16 %v1730_v23 }
  0x3d   :  { %1950 = vmatprep.subr.mxu0 %v1510_v25  ;;  %1985 = vmatprep.subr.mxu1 %v1478_v29 }
  0x3e   :  { %1951 = vmatpush3.msra.mxu0 %v1510_v25  ;;  %1986 = vmatpush3.msra.mxu1 %v1478_v29  ;;  %v1729_v29 = vld [vmem:[#allocation5 + $0x1a8] sm:$0xff]  }
  0x3f   :  { %1952 = vmatprep.subr.mxu0 %v1509_v28  ;;  %1987 = vmatprep.subr.mxu1 %v1477_v32  ;;  %v2503_v30 = vunpack.c.h.bf16 %v1729_v29 }
  0x40   :  { %1953 = vmatpush3.msra.mxu0 %v1509_v28  ;;  %1988 = vmatpush3.msra.mxu1 %v1477_v32  ;;  %v2488_v28 = vunpack.c.l.bf16 %v1730_v23  ;;  %v1728_v32 = vld [vmem:[#allocation5 + $0x1a0] sm:$0xff]   ;;  %v1710_v23 = vld [vmem:[#allocation5 + $0xf8] sm:$0xff]  }
  0x41   :  { %1954 = vmatprep.subr.mxu0 %v1506_v31  ;;  %1989 = vmatprep.subr.mxu1 %v1474_v35  ;;  %v2512_v33 = vunpack.c.h.bf16 %v1728_v32 }
  0x42   :  { %1955 = vmatpush3.msra.mxu0 %v1506_v31  ;;  %1990 = vmatpush3.msra.mxu1 %v1474_v35  ;;  %v2506_v31 = vunpack.c.l.bf16 %v1729_v29  ;;  %v1727_v35 = vld [vmem:[#allocation5 + $0x198] sm:$0xff]   ;;  %v1585_v29 = vunpack.c.l.bf16 %v1710_v23 }
  0x43   :  { %1956 = vmatprep.subr.mxu0 %v1505_v34  ;;  %1991 = vmatprep.subr.mxu1 %v1473_v38  ;;  %v2524_v36 = vunpack.c.h.bf16 %v1727_v35 }
  0x44   :  { %1957 = vmatpush3.msra.mxu0 %v1505_v34  ;;  %1992 = vmatpush3.msra.mxu1 %v1473_v38  ;;  %v2518_v34 = vunpack.c.l.bf16 %v1728_v32  ;;  %v1726_v38 = vld [vmem:[#allocation5 + $0x190] sm:$0xff]  }
  0x45   :  { %1958 = vmatprep.subr.mxu0 %v1502_v37  ;;  %1993 = vmatprep.subr.mxu1 %v1470_v41  ;;  %v2536_v39 = vunpack.c.h.bf16 %v1726_v38 }
  0x46   :  { %1959 = vmatpush3.msra.mxu0 %v1502_v37  ;;  %1994 = vmatpush3.msra.mxu1 %v1470_v41  ;;  %v2530_v37 = vunpack.c.l.bf16 %v1727_v35  ;;  %v1725_v41 = vld [vmem:[#allocation5 + $0x188] sm:$0xff]  }
  0x47   :  { %1960 = vmatprep.subr.mxu0 %v1501_v40  ;;  %1995 = vmatprep.subr.mxu1 %v1469_v44  ;;  %v2548_v42 = vunpack.c.h.bf16 %v1725_v41  ;;  %v1708_v35 = vld [vmem:[#allocation5 + $0xe8] sm:$0xff]  }
  0x48   :  { %1961 = vmatpush3.msra.mxu0 %v1501_v40  ;;  %1996 = vmatpush3.msra.mxu1 %v1469_v44  ;;  %v2542_v40 = vunpack.c.l.bf16 %v1726_v38  ;;  %v1652_v44 = vld [vmem:[#allocation5 + $0x180] sm:$0xff]  }
  0x49   :  { %1962 = vmatprep.subr.mxu0 %v1498_v43  ;;  %1997 = vmatprep.subr.mxu1 %v1466_v47  ;;  %v2560_v45 = vunpack.c.h.bf16 %v1652_v44 }
  0x4a   :  { %1963 = vmatpush3.msra.mxu0 %v1498_v43  ;;  %1998 = vmatpush3.msra.mxu1 %v1466_v47  ;;  %v2554_v43 = vunpack.c.l.bf16 %v1725_v41  ;;  %v1578_v41 = vunpack.c.h.bf16 %v1708_v35 }
  0x4b   :  { %1964 = vmatprep.subr.mxu0 %v1497_v46  ;;  %1999 = vmatprep.subr.mxu1 %v1465_v49 }
  0x4c   :  { %1965 = vmatpush3.msra.mxu0 %v1497_v46  ;;  %2000 = vmatpush3.msra.mxu1 %v1465_v49  ;;  %v2564_v46 = vunpack.c.l.bf16 %v1652_v44  ;;  %v1707_v44 = vld [vmem:[#allocation5 + $0xe0] sm:$0xff]  }
  0x4d   :  { %1966 = vmatprep.subr.mxu0 %v1494_v48  ;;  %2001 = vmatprep.subr.mxu1 %v1462_v11 }
  0x4e   :  { %1967 = vmatpush3.msra.mxu0 %v1494_v48  ;;  %2002 = vmatpush3.msra.mxu1 %v1462_v11 }
  0x4f   :  { %1968 = vmatprep.subr.mxu0 %v1493_v51  ;;  %2003 = vmatprep.subr.mxu1 %v1461_v13 }
  0x50   :  { %1969 = vmatpush3.msra.mxu0 %v1493_v51  ;;  %2004 = vmatpush3.msra.mxu1 %v1461_v13 }
  0x51   :  { %1971 = vmatmul.mubr.f32.vlgmr.msra.gmra.mxu0 %v2454_v0  ;;  %2008 = vmatprep.subr.mxu0 %v1554_v52  ;;  %v1538_v0 = vunpack.c.h.bf16 %v1699_v62 }
  0x52   :  { %2009 = vmatpush3.msra.mxu0 %v1554_v52  ;;  %2043 = vmatprep.subr.mxu1 %v2411_v18 }
  0x53   :  { %2010 = vmatprep.subr.mxu0 %v1553_v54 }
  0x54   :  { %2011 = vmatpush3.msra.mxu0 %v1553_v54 }
  0x55   :  { %2012 = vmatprep.subr.mxu0 %v1550_v55 }
  0x56   :  { %2013 = vmatpush3.msra.mxu0 %v1550_v55 }
  0x57   :  { %2014 = vmatprep.subr.mxu0 %v1549_v57 }
  0x58   :  { %2015 = vmatpush3.msra.mxu0 %v1549_v57 }
  0x59   :  { %2016 = vmatprep.subr.mxu0 %v1546_v58 }
  0x5a   :  { %2017 = vmatpush3.msra.mxu0 %v1546_v58 }
  0x5b   :  { %2018 = vmatprep.subr.mxu0 %v1545_v60 }
  0x5c   :  { %2019 = vmatpush3.msra.mxu0 %v1545_v60 }
  0x5d   :  { %2020 = vmatprep.subr.mxu0 %v1542_v61 }
  0x5e   :  { %2021 = vmatpush3.msra.mxu0 %v1542_v61 }
  0x5f   :  { %2022 = vmatprep.subr.mxu0 %v1541_v63 }
  0x60   :  { %2023 = vmatpush3.msra.mxu0 %v1541_v63 }
  0x61   :  { %2024 = vmatprep.subr.mxu0 %v1538_v0 }
  0x62   :  { %2025 = vmatpush3.msra.mxu0 %v1538_v0  ;;  %v765_v0 = vlaneseq }
  0x63   :  { %2026 = vmatprep.subr.mxu0 %v1537_v4 }
  0x64   :  { %2027 = vmatpush3.msra.mxu0 %v1537_v4  ;;  %v2579_v1 = vshrl.u32 %v765_v0, 7 }
  0x65   :  { %2028 = vmatprep.subr.mxu0 %v1534_v6 }
  0x66   :  { %2029 = vmatpush3.msra.mxu0 %v1534_v6  ;;  %v2582_v4 = vsub.s32 0, %v2579_v1  ;;  %v862_v0 = vsub.s32 1, %v2579_v1 }
  0x67   :  { %2030 = vmatprep.subr.mxu0 %v1533_v7 }
  0x68   :  { %2031 = vmatpush3.msra.mxu0 %v1533_v7 }
  0x69   :  { %2032 = vmatprep.subr.mxu0 %v1530_v12 }
  0x6a   :  { %2033 = vmatpush3.msra.mxu0 %v1530_v12 }
  0x6b   :  { %2034 = vmatprep.subr.mxu0 %v1529_v14 }
  0x6c   :  { %2035 = vmatpush3.msra.mxu0 %v1529_v14 }
  0x6d   :  { %2036 = vmatprep.subr.mxu0 %v1526_v16 }
  0x6e   :  { %2037 = vmatpush3.msra.mxu0 %v1526_v16 }
  0x6f   :  { %2038 = vmatprep.subr.mxu0 %v1525_v17 }
  0x70   :  { %2039 = vmatpush3.msra.mxu0 %v1525_v17 }
  0x71   :  { %2078 = vmatprep.subr.mxu0 %v2411_v18 }
  0xed   :  { %v1930_v20 = vpop.f32.mrf.mxu0 }
  0xef   :  { %v370_v22 = vpop.f32.mrf.mxu0 }
  0xf0   :  { %2005 = vmatprep.mubr.f32.mxu1 %v370_v22 }
  0xf1   :  { %v1937_v25 = vpop.f32.mrf.mxu0  ;;  %2006 = vmatmul.mubr.f32.vlgmr.msra.gmra.mxu1 %v1930_v20 }
  0xf2   :  { %2044 = vmatpush3.msra.mxu1 %v2479_v21  ;;  %2075 = vmatprep.mubr.msk.f32.mxu1 %vm2412_vm1, %v2411_v18 }
  0xf3   :  { %v451_v27 = vpop.f32.mrf.mxu0  ;;  %2045 = vmatprep.subr.mxu1 %v2411_v18 }
  0xf4   :  { %2040 = vmatprep.mubr.f32.mxu0 %v451_v27  ;;  %2046 = vmatpush3.msra.mxu1 %v2481_v24  ;;  %v1586_v27 = vunpack.c.h.bf16 %v1710_v23 }
  0xf5   :  { %2041 = vmatmul.mubr.f32.vlgmr.msra.gmra.mxu0 %v1937_v25  ;;  %2047 = vmatprep.subr.mxu1 %v2411_v18  ;;  %v1709_v25 = vld [vmem:[#allocation5 + $0xf0] sm:$0xff]  }
  0xf6   :  { %2048 = vmatpush3.msra.mxu1 %v2484_v26  ;;  %2079 = vmatpush3.msra.mxu0 %v2479_v21  ;;  %v1582_v32 = vunpack.c.h.bf16 %v1709_v25  ;;  %v1581_v38 = vunpack.c.l.bf16 %v1709_v25 }
  0xf7   :  { %2049 = vmatprep.subr.mxu1 %v2411_v18  ;;  %2080 = vmatprep.subr.mxu0 %v2411_v18 }
  0xf8   :  { %2050 = vmatpush3.msra.mxu1 %v2488_v28  ;;  %2081 = vmatpush3.msra.mxu0 %v2481_v24 }
  0xf9   :  { %2051 = vmatprep.subr.mxu1 %v2411_v18  ;;  %2082 = vmatprep.subr.mxu0 %v2411_v18 }
  0xfa   :  { %2083 = vmatpush3.msra.mxu0 %v2484_v26  ;;  %2052 = vmatpush3.msra.mxu1 %v2503_v30 }
  0xfb   :  { %2084 = vmatprep.subr.mxu0 %v2411_v18  ;;  %2053 = vmatprep.subr.mxu1 %v2411_v18 }
  0xfc   :  { %2085 = vmatpush3.msra.mxu0 %v2488_v28  ;;  %2054 = vmatpush3.msra.mxu1 %v2506_v31 }
  0xfd   :  { %2086 = vmatprep.subr.mxu0 %v2411_v18  ;;  %2055 = vmatprep.subr.mxu1 %v2411_v18 }
  0xfe   :  { %2087 = vmatpush3.msra.mxu0 %v2503_v30  ;;  %2056 = vmatpush3.msra.mxu1 %v2512_v33 }
  0xff   :  { %2088 = vmatprep.subr.mxu0 %v2411_v18  ;;  %2057 = vmatprep.subr.mxu1 %v2411_v18 }
 0x100   :  { %2089 = vmatpush3.msra.mxu0 %v2506_v31  ;;  %2058 = vmatpush3.msra.mxu1 %v2518_v34 }
 0x101   :  { %2090 = vmatprep.subr.mxu0 %v2411_v18  ;;  %2059 = vmatprep.subr.mxu1 %v2411_v18 }
 0x102   :  { %2091 = vmatpush3.msra.mxu0 %v2512_v33  ;;  %2060 = vmatpush3.msra.mxu1 %v2524_v36 }
 0x103   :  { %2092 = vmatprep.subr.mxu0 %v2411_v18  ;;  %2061 = vmatprep.subr.mxu1 %v2411_v18 }
 0x104   :  { %2093 = vmatpush3.msra.mxu0 %v2518_v34  ;;  %2062 = vmatpush3.msra.mxu1 %v2530_v37 }
 0x105   :  { %2094 = vmatprep.subr.mxu0 %v2411_v18  ;;  %2063 = vmatprep.subr.mxu1 %v2411_v18 }
 0x106   :  { %2095 = vmatpush3.msra.mxu0 %v2524_v36  ;;  %2064 = vmatpush3.msra.mxu1 %v2536_v39 }
 0x107   :  { %2096 = vmatprep.subr.mxu0 %v2411_v18  ;;  %2065 = vmatprep.subr.mxu1 %v2411_v18 }
 0x108   :  { %2097 = vmatpush3.msra.mxu0 %v2530_v37  ;;  %2066 = vmatpush3.msra.mxu1 %v2542_v40 }
 0x109   :  { %2098 = vmatprep.subr.mxu0 %v2411_v18  ;;  %2067 = vmatprep.subr.mxu1 %v2411_v18 }
 0x10a   :  { %2099 = vmatpush3.msra.mxu0 %v2536_v39  ;;  %2068 = vmatpush3.msra.mxu1 %v2548_v42 }
 0x10b   :  { %2100 = vmatprep.subr.mxu0 %v2411_v18  ;;  %2069 = vmatprep.subr.mxu1 %v2411_v18 }
 0x10c   :  { %2101 = vmatpush3.msra.mxu0 %v2542_v40  ;;  %2070 = vmatpush3.msra.mxu1 %v2554_v43 }
 0x10d   :  { %2102 = vmatprep.subr.mxu0 %v2411_v18  ;;  %2071 = vmatprep.subr.mxu1 %v2411_v18 }
 0x10e   :  { %2103 = vmatpush3.msra.mxu0 %v2548_v42  ;;  %2072 = vmatpush3.msra.mxu1 %v2560_v45 }
 0x10f   :  { %2104 = vmatprep.subr.mxu0 %v2411_v18  ;;  %2073 = vmatprep.subr.mxu1 %v2411_v18 }
 0x110   :  { %2105 = vmatpush3.msra.mxu0 %v2554_v43  ;;  %2074 = vmatpush3.msra.mxu1 %v2564_v46 }
 0x111   :  { %2106 = vmatprep.subr.mxu0 %v2411_v18  ;;  %2110 = vmatprep.mubr.msk.f32.mxu0 %vm2412_vm1, %v2411_v18  ;;  %v1972_v47 = vpop.f32.mrf.mxu0 }
 0x112   :  { %2107 = vmatpush3.msra.mxu0 %v2560_v45 }
 0x113   :  { %2108 = vmatprep.subr.mxu0 %v2411_v18  ;;  %v526_v49 = vpop.f32.mrf.mxu0 }
 0x114   :  { %2109 = vmatpush3.msra.mxu0 %v2564_v46 }
 0x115   :  { %2162 = vmatprep.subr.mxu0 %v1586_v27 }
 0x1b1   :  { %v2007_v48 = vpop.f32.mrf.mxu1 }
 0x1b2   :  { %v607_v52 = vadd.f32 %v2007_v48, %v1972_v47  ;;  %v1577_v47 = vunpack.c.l.bf16 %v1708_v35  ;;  %v1574_v48 = vunpack.c.h.bf16 %v1707_v44 }
 0x1b3   :  { %v601_v50 = vpop.f32.mrf.mxu1 }
 0x1b4   :  { %v602_v53 = vadd.f32 %v601_v50, %v526_v49  ;;  %v1706_v49 = vld [vmem:[#allocation5 + $0xd8] sm:$0xff]   ;;  %v1573_v50 = vunpack.c.l.bf16 %v1707_v44 }
 0x1b5   :  { %v2042_v51 = vpop.f32.mrf.mxu0 }
 0x1b6   :  { %v686_v55 = vadd.f32 %v2042_v51, %v607_v52  ;;  %v1570_v51 = vunpack.c.h.bf16 %v1706_v49  ;;  %v1705_v52 = vld [vmem:[#allocation5 + $0xd0] sm:$0xff]  }
 0x1b7   :  { %v676_v54 = vpop.f32.mrf.mxu0 }
 0x1b8   :  { %v685_v56 = vadd.f32 %v676_v54, %v602_v53  ;;  %v1569_v53 = vunpack.c.l.bf16 %v1706_v49  ;;  %v1566_v54 = vunpack.c.h.bf16 %v1705_v52 }
 0x1ba   :  { %v687_v57 = vadd.f32 %v686_v55, %v685_v56 }
 0x1bc   :  { %v688_v58 = vrot.slane %v687_v57, 4 }
 0x1be   :  { %v689_v59 = vadd.f32 %v688_v58, %v687_v57 }
 0x1c0   :  { %v690_v60 = vrot.slane %v689_v59, 2 }
 0x1c2   :  { %v691_v61 = vadd.f32 %v690_v60, %v689_v59 }
 0x1c4   :  { %v692_v62 = vrot.slane %v691_v61, 1 }
 0x1c6   :  { %v693_v63 = vadd.f32 %v692_v62, %v691_v61 }
 0x1c8   :  { %2076 = vmatmul.mubr.f32.vlgmr.msra.gmra.mxu1 %v693_v63  ;;  %v2596_v63 = vld [vmem:[%s2699_s3] sm:$0xf]  ;;  %s2413_s3 = smov [#allocation8]  }
 0x1c9   :  { %2117 = vmatprep.mubr.msk.f32.mxu1 %vm297_vm0, %v2456_v2  ;;  %s1438_s7 = sshll.u32 %s2413_s3, 4  ;;  %s1439_s7 = int_to_ptr.vmem [resolvable:$true] %s1438_s7 }
 0x1ca   :  { %s2378_s8 = scalar_lea.vmem %s1439_s7, 256  ;;  %p2383_p2 = scmp.lt.s32.totalorder %s1439_s7, %s1439_s7 }
 0x1cb   :  { %p2379_p1 = scmp.ne.s32.totalorder %s1439_s7, %s2378_s8  ;;  %p2384_p3 = scmp.lt.s32.totalorder %s2378_s8, %s2378_s8 }
 0x1cd   :  { %p2385_p4 = por %p2384_p3, %p2383_p2 }
 0x1cf   :  { %p2386_p5 = pnand %p2385_p4, %p2379_p1 }
 0x288   :  { %v760_v6 = vpop.f32.mrf.mxu1 }
 0x289   :  { %v764_v7 = vmul.f32 0.001953125, %v760_v6 }
 0x28a   :  { %v2077_v9 = vpop.f32.mrf.mxu1 }
 0x28b   :  { %v768_v10 = vrot.slane %v764_v7, %v2582_v4 }
 0x28d   :  { %v2585_v11 = vsub.f32 %v685_v56, %v768_v10  ;;  %v2587_v12 = vsub.f32 %v686_v55, %v768_v10  ;;  %v1704_v55 = vld [vmem:[#allocation5 + $0xc8] sm:$0xff]   ;;  %v1565_v56 = vunpack.c.l.bf16 %v1705_v52  ;;  %v863_v10 = vrot.slane %v2596_v63, %v862_v0 }
 0x28e   :  { %v1562_v57 = vunpack.c.h.bf16 %v1704_v55  ;;  %v1561_v58 = vunpack.c.l.bf16 %v1704_v55 }
 0x28f   :  { %v771_v13 = vmul.f32 %v2585_v11, %v2585_v11  ;;  %v772_v2 = vmul.f32 %v2587_v12, %v2587_v12 }
 0x291   :  { %v773_v14 = vadd.f32 %v772_v2, %v771_v13 }
 0x293   :  { %v774_v15 = vrot.slane %v773_v14, 4 }
 0x295   :  { %v775_v16 = vadd.f32 %v774_v15, %v773_v14 }
 0x297   :  { %v776_v17 = vrot.slane %v775_v16, 2 }
 0x299   :  { %v777_v19 = vadd.f32 %v776_v17, %v775_v16 }
 0x29b   :  { %v778_v20 = vrot.slane %v777_v19, 1 }
 0x29d   :  { %v779_v22 = vadd.f32 %v778_v20, %v777_v19  ;;  %v1717_v19 = vld [vmem:[#allocation5 + $0x138] sm:$0xff]  }
 0x29e   :  { %v1617_v20 = vunpack.c.l.bf16 %v1717_v19 }
 0x29f   :  { %2111 = vmatmul.mubr.f32.vlgmr.msra.gmra.mxu0 %v779_v22 }
 0x2a0   :  { %2163 = vmatpush3.msra.mxu0 %v1586_v27  ;;  %v1714_v27 = vld [vmem:[#allocation5 + $0x120] sm:$0xff]  }
 0x2a1   :  { %2164 = vmatprep.subr.mxu0 %v1585_v29 }
 0x2a2   :  { %2165 = vmatpush3.msra.mxu0 %v1585_v29  ;;  %v1606_v29 = vunpack.c.h.bf16 %v1714_v27 }
 0x2a3   :  { %2166 = vmatprep.subr.mxu0 %v1582_v32 }
 0x2a4   :  { %2167 = vmatpush3.msra.mxu0 %v1582_v32  ;;  %v1713_v32 = vld [vmem:[#allocation5 + $0x118] sm:$0xff]  }
 0x2a5   :  { %2168 = vmatprep.subr.mxu0 %v1581_v38  ;;  %v1602_v35 = vunpack.c.h.bf16 %v1713_v32 }
 0x2a6   :  { %2169 = vmatpush3.msra.mxu0 %v1581_v38  ;;  %v1712_v38 = vld [vmem:[#allocation5 + $0x110] sm:$0xff]  }
 0x2a7   :  { %2170 = vmatprep.subr.mxu0 %v1578_v41  ;;  %v1598_v44 = vunpack.c.h.bf16 %v1712_v38 }
 0x2a8   :  { %2171 = vmatpush3.msra.mxu0 %v1578_v41  ;;  %v1601_v41 = vunpack.c.l.bf16 %v1713_v32 }
 0x2a9   :  { %2172 = vmatprep.subr.mxu0 %v1577_v47 }
 0x2aa   :  { %2173 = vmatpush3.msra.mxu0 %v1577_v47  ;;  %v1711_v47 = vld [vmem:[#allocation5 + $0x108] sm:$0xff]  }
 0x2ab   :  { %2174 = vmatprep.subr.mxu0 %v1574_v48  ;;  %v1594_v49 = vunpack.c.h.bf16 %v1711_v47 }
 0x2ac   :  { %2175 = vmatpush3.msra.mxu0 %v1574_v48  ;;  %v1597_v48 = vunpack.c.l.bf16 %v1712_v38 }
 0x2ad   :  { %2176 = vmatprep.subr.mxu0 %v1573_v50 }
 0x2ae   :  { %2177 = vmatpush3.msra.mxu0 %v1573_v50  ;;  %v1588_v50 = vld [vmem:[#allocation5 + $0x100] sm:$0xff]  }
 0x2af   :  { %2178 = vmatprep.subr.mxu0 %v1570_v51  ;;  %v1590_v52 = vunpack.c.h.bf16 %v1588_v50 }
 0x2b0   :  { %2179 = vmatpush3.msra.mxu0 %v1570_v51  ;;  %v1593_v51 = vunpack.c.l.bf16 %v1711_v47 }
 0x2b1   :  { %2180 = vmatprep.subr.mxu0 %v1569_v53 }
 0x2b2   :  { %2181 = vmatpush3.msra.mxu0 %v1569_v53  ;;  %v1724_v53 = vld [vmem:[#allocation5 + $0x178] sm:$0xff]  }
 0x2b3   :  { %2182 = vmatprep.subr.mxu0 %v1566_v54  ;;  %v1650_v55 = vunpack.c.h.bf16 %v1724_v53 }
 0x2b4   :  { %2183 = vmatpush3.msra.mxu0 %v1566_v54  ;;  %v1589_v54 = vunpack.c.l.bf16 %v1588_v50 }
 0x2b5   :  { %2184 = vmatprep.subr.mxu0 %v1565_v56 }
 0x2b6   :  { %2185 = vmatpush3.msra.mxu0 %v1565_v56  ;;  %v1723_v56 = vld [vmem:[#allocation5 + $0x170] sm:$0xff]  }
 0x2b7   :  { %2186 = vmatprep.subr.mxu0 %v1562_v57 }
 0x2b8   :  { %2187 = vmatpush3.msra.mxu0 %v1562_v57  ;;  %v1649_v57 = vunpack.c.l.bf16 %v1724_v53 }
 0x2b9   :  { %2188 = vmatprep.subr.mxu0 %v1561_v58 }
 0x2ba   :  { %2189 = vmatpush3.msra.mxu0 %v1561_v58  ;;  %v1646_v58 = vunpack.c.h.bf16 %v1723_v56 }
 0x35f   :  { %v846_v59 = vpop.f32.mrf.mxu0 }
 0x360   :  { %v850_v60 = vmul.f32 0.001953125, %v846_v59  ;;  %v1722_v59 = vld [vmem:[#allocation5 + $0x168] sm:$0xff]  }
 0x361   :  { %v2112_v61 = vpop.f32.mrf.mxu0  ;;  %v1641_v0 = vunpack.c.l.bf16 %v1722_v59 }
 0x362   :  { %v851_v62 = vadd.f32 1e-05, %v850_v60  ;;  %v1645_v60 = vunpack.c.l.bf16 %v1723_v56  ;;  %v1642_v61 = vunpack.c.h.bf16 %v1722_v59 }
 0x364   :  { %2312 = vrsqrt.f32 %v851_v62  ;;  %v1721_v62 = vld [vmem:[#allocation5 + $0x160] sm:$0xff]  }
 0x371   :  { %v2313_v6 = vpop.eup %2312 }
 0x372   :  { %v853_v7 = vmul.f32 %v2313_v6, %v2596_v63  ;;  %v1638_v6 = vunpack.c.h.bf16 %v1721_v62 }
 0x374   :  { %v857_v9 = vrot.slane %v853_v7, %v2582_v4  ;;  %v1720_v7 = vld [vmem:[#allocation5 + $0x158] sm:$0xff]  }
 0x376   :  { %v859_v13 = vmul.f32 %v857_v9, %v2587_v12  ;;  %v858_v2 = vmul.f32 %v857_v9, %v2585_v11  ;;  %v1618_v12 = vunpack.c.h.bf16 %v1717_v19  ;;  %v1716_v11 = vld [vmem:[#allocation5 + $0x130] sm:$0xff]   ;;  %v1637_v9 = vunpack.c.l.bf16 %v1721_v62 }
 0x377   :  { %v1614_v22 = vunpack.c.h.bf16 %v1716_v11  ;;  %v1613_v23 = vunpack.c.l.bf16 %v1716_v11  ;;  %v1423_v62 = vsub.s32 3, %v2579_v1 }
 0x378   :  { %v865_v14 = vadd.f32 %v863_v10, %v859_v13  ;;  %v864_v15 = vadd.f32 %v863_v10, %v858_v2  ;;  %v1634_v10 = vunpack.c.h.bf16 %v1720_v7  ;;  %v1719_v13 = vld [vmem:[#allocation5 + $0x150] sm:$0xff]   ;;  %v1633_v2 = vunpack.c.l.bf16 %v1720_v7 }
 0x379   :  { %v1424_v7 = vrot.slane %v2596_v63, %v1423_v62 }
 0x37a   :  { %v2604_v16 = vmax.f32 %v865_v14, 0.0  ;;  %v866_v17 = vmax.f32 %v864_v15, 0.0  ;;  %v1630_v14 = vunpack.c.h.bf16 %v1719_v13  ;;  %v1629_v15 = vunpack.c.l.bf16 %v1719_v13 }
 0x37c   :  { %2113 = vmatprep.subr.mxu1 %v2604_v16 }
 0x37d   :  { %2114 = vmatpush3.msra.mxu1 %v2604_v16 }
 0x37e   :  { %2115 = vmatprep.subr.mxu1 %v866_v17 }
 0x37f   :  { %2116 = vmatpush3.msra.mxu1 %v866_v17 }
 0x380   :  { %2118 = vmatmul.mubr.msk.f32.vlgmr.msra.gmra.mxu1 %vm297_vm0, %v2462_v3  ;;  %2120 = vmatprep.subr.mxu1 %v2604_v16  ;;  %v1715_v3 = vld [vmem:[#allocation5 + $0x128] sm:$0xff]  }
 0x381   :  { %2121 = vmatpush3.msra.mxu1 %v2604_v16  ;;  %2124 = vmatprep.mubr.msk.f32.mxu1 %vm297_vm0, %v2464_v5  ;;  %v1610_v25 = vunpack.c.h.bf16 %v1715_v3  ;;  %v1609_v5 = vunpack.c.l.bf16 %v1715_v3 }
 0x382   :  { %2122 = vmatprep.subr.mxu1 %v866_v17 }
 0x383   :  { %2123 = vmatpush3.msra.mxu1 %v866_v17 }
 0x384   :  { %2125 = vmatmul.mubr.msk.f32.vlgmr.msra.gmra.mxu1 %vm297_vm0, %v2472_v8  ;;  %2127 = vmatprep.subr.mxu1 %v1618_v12  ;;  %v1605_v8 = vunpack.c.l.bf16 %v1714_v27 }
 0x385   :  { %2128 = vmatpush3.msra.mxu1 %v1618_v12  ;;  %2159 = vmatprep.mubr.f32.mxu1 %v866_v17  ;;  %v1718_v17 = vld [vmem:[#allocation5 + $0x148] sm:$0xff]  }
 0x386   :  { %2129 = vmatprep.subr.mxu1 %v1617_v20  ;;  %v1626_v12 = vunpack.c.h.bf16 %v1718_v17 }
 0x387   :  { %2130 = vmatpush3.msra.mxu1 %v1617_v20  ;;  %v1625_v20 = vunpack.c.l.bf16 %v1718_v17 }
 0x388   :  { %2131 = vmatprep.subr.mxu1 %v1614_v22 }
 0x389   :  { %2132 = vmatpush3.msra.mxu1 %v1614_v22  ;;  %v1620_v22 = vld [vmem:[#allocation5 + $0x140] sm:$0xff]  }
 0x38a   :  { %2133 = vmatprep.subr.mxu1 %v1613_v23  ;;  %v1622_v3 = vunpack.c.h.bf16 %v1620_v22 }
 0x38b   :  { %2134 = vmatpush3.msra.mxu1 %v1613_v23  ;;  %v1621_v23 = vunpack.c.l.bf16 %v1620_v22 }
 0x38c   :  { %2135 = vmatprep.subr.mxu1 %v1610_v25 }
 0x38d   :  { %2136 = vmatpush3.msra.mxu1 %v1610_v25 }
 0x38e   :  { %2137 = vmatprep.subr.mxu1 %v1609_v5 }
 0x38f   :  { %2138 = vmatpush3.msra.mxu1 %v1609_v5 }
 0x390   :  { %2139 = vmatprep.subr.mxu1 %v1606_v29 }
 0x391   :  { %2140 = vmatpush3.msra.mxu1 %v1606_v29 }
 0x392   :  { %2141 = vmatprep.subr.mxu1 %v1605_v8 }
 0x393   :  { %2142 = vmatpush3.msra.mxu1 %v1605_v8 }
 0x394   :  { %2143 = vmatprep.subr.mxu1 %v1602_v35 }
 0x395   :  { %2144 = vmatpush3.msra.mxu1 %v1602_v35 }
 0x396   :  { %2145 = vmatprep.subr.mxu1 %v1601_v41 }
 0x397   :  { %2146 = vmatpush3.msra.mxu1 %v1601_v41 }
 0x398   :  { %2147 = vmatprep.subr.mxu1 %v1598_v44 }
 0x399   :  { %2148 = vmatpush3.msra.mxu1 %v1598_v44 }
 0x39a   :  { %2149 = vmatprep.subr.mxu1 %v1597_v48 }
 0x39b   :  { %2150 = vmatpush3.msra.mxu1 %v1597_v48 }
 0x39c   :  { %2151 = vmatprep.subr.mxu1 %v1594_v49 }
 0x39d   :  { %2152 = vmatpush3.msra.mxu1 %v1594_v49 }
 0x39e   :  { %2153 = vmatprep.subr.mxu1 %v1593_v51 }
 0x39f   :  { %2154 = vmatpush3.msra.mxu1 %v1593_v51 }
 0x3a0   :  { %2155 = vmatprep.subr.mxu1 %v1590_v52 }
 0x3a1   :  { %2156 = vmatpush3.msra.mxu1 %v1590_v52 }
 0x3a2   :  { %2157 = vmatprep.subr.mxu1 %v1589_v54 }
 0x3a3   :  { %2158 = vmatpush3.msra.mxu1 %v1589_v54 }
 0x3a4   :  { %2160 = vmatmul.mubr.f32.vlgmr.msra.gmra.mxu1 %v2604_v16  ;;  %2197 = vmatprep.subr.mxu1 %v1650_v55  ;;  %v1556_v16 = vld [vmem:[#allocation5 + $0xc0] sm:$0xff]  }
 0x3a5   :  { %2198 = vmatpush3.msra.mxu1 %v1650_v55  ;;  %v1558_v19 = vunpack.c.h.bf16 %v1556_v16  ;;  %v1557_v11 = vunpack.c.l.bf16 %v1556_v16  ;;  %v2317_v16 = vld [vmem:[#allocation2 + $0x8] sm:$0xff] }
 0x3a6   :  { %2199 = vmatprep.subr.mxu1 %v1649_v57 }
 0x3a7   :  { %2200 = vmatpush3.msra.mxu1 %v1649_v57  ;;  %2190 = vmatprep.subr.mxu0 %v1558_v19 }
 0x3a8   :  { %2201 = vmatprep.subr.mxu1 %v1646_v58  ;;  %2191 = vmatpush3.msra.mxu0 %v1558_v19 }
 0x3a9   :  { %2202 = vmatpush3.msra.mxu1 %v1646_v58  ;;  %2192 = vmatprep.subr.mxu0 %v1557_v11 }
 0x3aa   :  { %2203 = vmatprep.subr.mxu1 %v1645_v60  ;;  %2193 = vmatpush3.msra.mxu0 %v1557_v11 }
 0x3ab   :  { %2204 = vmatpush3.msra.mxu1 %v1645_v60  ;;  %2232 = vmatprep.subr.mxu0 %v2411_v18 }
 0x3ac   :  { %2205 = vmatprep.subr.mxu1 %v1642_v61 }
 0x3ad   :  { %2206 = vmatpush3.msra.mxu1 %v1642_v61 }
 0x3ae   :  { %2207 = vmatprep.subr.mxu1 %v1641_v0 }
 0x3af   :  { %2208 = vmatpush3.msra.mxu1 %v1641_v0 }
 0x3b0   :  { %2209 = vmatprep.subr.mxu1 %v1638_v6 }
 0x3b1   :  { %2210 = vmatpush3.msra.mxu1 %v1638_v6 }
 0x3b2   :  { %2211 = vmatprep.subr.mxu1 %v1637_v9 }
 0x3b3   :  { %2212 = vmatpush3.msra.mxu1 %v1637_v9 }
 0x3b4   :  { %2213 = vmatprep.subr.mxu1 %v1634_v10 }
 0x3b5   :  { %2214 = vmatpush3.msra.mxu1 %v1634_v10 }
 0x3b6   :  { %2215 = vmatprep.subr.mxu1 %v1633_v2 }
 0x3b7   :  { %2216 = vmatpush3.msra.mxu1 %v1633_v2 }
 0x3b8   :  { %2217 = vmatprep.subr.mxu1 %v1630_v14 }
 0x3b9   :  { %2218 = vmatpush3.msra.mxu1 %v1630_v14  ;;  %v2316_v14 = vld [vmem:[#allocation2] sm:$0xff] }
 0x3ba   :  { %2219 = vmatprep.subr.mxu1 %v1629_v15 }
 0x3bb   :  { %2220 = vmatpush3.msra.mxu1 %v1629_v15 }
 0x3bc   :  { %2221 = vmatprep.subr.mxu1 %v1626_v12 }
 0x3bd   :  { %2222 = vmatpush3.msra.mxu1 %v1626_v12 }
 0x3be   :  { %2223 = vmatprep.subr.mxu1 %v1625_v20 }
 0x3bf   :  { %2224 = vmatpush3.msra.mxu1 %v1625_v20 }
 0x3c0   :  { %2225 = vmatprep.subr.mxu1 %v1622_v3 }
 0x3c1   :  { %2226 = vmatpush3.msra.mxu1 %v1622_v3 }
 0x3c2   :  { %2227 = vmatprep.subr.mxu1 %v1621_v23 }
 0x3c3   :  { %2228 = vmatpush3.msra.mxu1 %v1621_v23 }
 0x3c4   :  { %2267 = vmatprep.subr.mxu1 %v2411_v18 }
 0x440   :  { %v2119_v25 = vpop.f32.mrf.mxu1 }
 0x442   :  { %v934_v27 = vpop.f32.mrf.mxu1 }
 0x443   :  { %2194 = vmatprep.mubr.f32.mxu0 %v934_v27 }
 0x444   :  { %v2126_v5 = vpop.f32.mrf.mxu1  ;;  %2195 = vmatmul.mubr.f32.vlgmr.msra.gmra.mxu0 %v2119_v25 }
 0x445   :  { %2233 = vmatpush3.msra.mxu0 %v2479_v21  ;;  %2264 = vmatprep.mubr.msk.f32.mxu0 %vm2412_vm1, %v2411_v18 }
 0x446   :  { %v1009_v29 = vpop.f32.mrf.mxu1  ;;  %2234 = vmatprep.subr.mxu0 %v2411_v18 }
 0x447   :  { %2229 = vmatprep.mubr.f32.mxu1 %v1009_v29  ;;  %2235 = vmatpush3.msra.mxu0 %v2481_v24 }
 0x448   :  { %2230 = vmatmul.mubr.f32.vlgmr.msra.gmra.mxu1 %v2126_v5  ;;  %2236 = vmatprep.subr.mxu0 %v2411_v18 }
 0x449   :  { %2237 = vmatpush3.msra.mxu0 %v2484_v26  ;;  %2268 = vmatpush3.msra.mxu1 %v2479_v21 }
 0x44a   :  { %2238 = vmatprep.subr.mxu0 %v2411_v18  ;;  %2269 = vmatprep.subr.mxu1 %v2411_v18 }
 0x44b   :  { %2239 = vmatpush3.msra.mxu0 %v2488_v28  ;;  %2270 = vmatpush3.msra.mxu1 %v2481_v24 }
 0x44c   :  { %2240 = vmatprep.subr.mxu0 %v2411_v18  ;;  %2271 = vmatprep.subr.mxu1 %v2411_v18 }
 0x44d   :  { %2241 = vmatpush3.msra.mxu0 %v2503_v30  ;;  %2272 = vmatpush3.msra.mxu1 %v2484_v26 }
 0x44e   :  { %2242 = vmatprep.subr.mxu0 %v2411_v18  ;;  %2273 = vmatprep.subr.mxu1 %v2411_v18 }
 0x44f   :  { %2243 = vmatpush3.msra.mxu0 %v2506_v31  ;;  %2274 = vmatpush3.msra.mxu1 %v2488_v28 }
 0x450   :  { %2244 = vmatprep.subr.mxu0 %v2411_v18  ;;  %2275 = vmatprep.subr.mxu1 %v2411_v18 }
 0x451   :  { %2245 = vmatpush3.msra.mxu0 %v2512_v33  ;;  %2276 = vmatpush3.msra.mxu1 %v2503_v30 }
 0x452   :  { %2246 = vmatprep.subr.mxu0 %v2411_v18  ;;  %2277 = vmatprep.subr.mxu1 %v2411_v18 }
 0x453   :  { %2247 = vmatpush3.msra.mxu0 %v2518_v34  ;;  %2278 = vmatpush3.msra.mxu1 %v2506_v31 }
 0x454   :  { %2248 = vmatprep.subr.mxu0 %v2411_v18  ;;  %2279 = vmatprep.subr.mxu1 %v2411_v18 }
 0x455   :  { %2249 = vmatpush3.msra.mxu0 %v2524_v36  ;;  %2280 = vmatpush3.msra.mxu1 %v2512_v33 }
 0x456   :  { %2250 = vmatprep.subr.mxu0 %v2411_v18  ;;  %2281 = vmatprep.subr.mxu1 %v2411_v18 }
 0x457   :  { %2251 = vmatpush3.msra.mxu0 %v2530_v37  ;;  %2282 = vmatpush3.msra.mxu1 %v2518_v34 }
 0x458   :  { %2252 = vmatprep.subr.mxu0 %v2411_v18  ;;  %2283 = vmatprep.subr.mxu1 %v2411_v18 }
 0x459   :  { %2253 = vmatpush3.msra.mxu0 %v2536_v39  ;;  %2284 = vmatpush3.msra.mxu1 %v2524_v36 }
 0x45a   :  { %2254 = vmatprep.subr.mxu0 %v2411_v18  ;;  %2285 = vmatprep.subr.mxu1 %v2411_v18 }
 0x45b   :  { %2255 = vmatpush3.msra.mxu0 %v2542_v40  ;;  %2286 = vmatpush3.msra.mxu1 %v2530_v37 }
 0x45c   :  { %2256 = vmatprep.subr.mxu0 %v2411_v18  ;;  %2287 = vmatprep.subr.mxu1 %v2411_v18 }
 0x45d   :  { %2257 = vmatpush3.msra.mxu0 %v2548_v42  ;;  %2288 = vmatpush3.msra.mxu1 %v2536_v39 }
 0x45e   :  { %2258 = vmatprep.subr.mxu0 %v2411_v18  ;;  %2289 = vmatprep.subr.mxu1 %v2411_v18 }
 0x45f   :  { %2259 = vmatpush3.msra.mxu0 %v2554_v43  ;;  %2290 = vmatpush3.msra.mxu1 %v2542_v40 }
 0x460   :  { %2260 = vmatprep.subr.mxu0 %v2411_v18  ;;  %2291 = vmatprep.subr.mxu1 %v2411_v18 }
 0x461   :  { %2261 = vmatpush3.msra.mxu0 %v2560_v45  ;;  %2292 = vmatpush3.msra.mxu1 %v2548_v42 }
 0x462   :  { %2262 = vmatprep.subr.mxu0 %v2411_v18  ;;  %2293 = vmatprep.subr.mxu1 %v2411_v18 }
 0x463   :  { %2263 = vmatpush3.msra.mxu0 %v2564_v46  ;;  %2294 = vmatpush3.msra.mxu1 %v2554_v43 }
 0x464   :  { %2295 = vmatprep.subr.mxu1 %v2411_v18  ;;  %2299 = vmatprep.mubr.msk.f32.mxu1 %vm2412_vm1, %v2411_v18  ;;  %v2161_v21 = vpop.f32.mrf.mxu1 }
 0x465   :  { %2296 = vmatpush3.msra.mxu1 %v2560_v45 }
 0x466   :  { %2297 = vmatprep.subr.mxu1 %v2411_v18  ;;  %v1084_v26 = vpop.f32.mrf.mxu1 }
 0x467   :  { %2298 = vmatpush3.msra.mxu1 %v2564_v46 }
 0x504   :  { %v2196_v24 = vpop.f32.mrf.mxu0 }
 0x505   :  { %v1165_v31 = vadd.f32 %v2196_v24, %v2161_v21 }
 0x506   :  { %v1159_v28 = vpop.f32.mrf.mxu0 }
 0x507   :  { %v1160_v33 = vadd.f32 %v1159_v28, %v1084_v26 }
 0x508   :  { %v2231_v30 = vpop.f32.mrf.mxu1 }
 0x509   :  { %v1244_v36 = vadd.f32 %v2231_v30, %v1165_v31 }
 0x50a   :  { %v1234_v34 = vpop.f32.mrf.mxu1 }
 0x50b   :  { %v1243_v37 = vadd.f32 %v1234_v34, %v1160_v33 }
 0x50d   :  { %v1245_v39 = vadd.f32 %v1244_v36, %v1243_v37 }
 0x50f   :  { %v1246_v40 = vrot.slane %v1245_v39, 4 }
 0x511   :  { %v1247_v42 = vadd.f32 %v1246_v40, %v1245_v39 }
 0x513   :  { %v1248_v43 = vrot.slane %v1247_v42, 2 }
 0x515   :  { %v1249_v32 = vadd.f32 %v1248_v43, %v1247_v42 }
 0x517   :  { %v1250_v45 = vrot.slane %v1249_v32, 1 }
 0x519   :  { %v1251_v8 = vadd.f32 %v1250_v45, %v1249_v32 }
 0x51b   :  { %2265 = vmatmul.mubr.f32.vlgmr.msra.gmra.mxu0 %v1251_v8 }
 0x5db   :  { %v1318_v18 = vpop.f32.mrf.mxu0 }
 0x5dc   :  { %v1322_v46 = vmul.f32 0.001953125, %v1318_v18 }
 0x5dd   :  { %v2266_v35 = vpop.f32.mrf.mxu0 }
 0x5de   :  { %v1326_v38 = vrot.slane %v1322_v46, %v2582_v4  ;;  %v1417_v4 = vsub.s32 2, %v2579_v1 }
 0x5e0   :  { %v1327_v41 = vsub.f32 %v1243_v37, %v1326_v38  ;;  %v1328_v44 = vsub.f32 %v1244_v36, %v1326_v38 }
 0x5e2   :  { %v1329_v47 = vmul.f32 %v1327_v41, %v1327_v41  ;;  %v1330_v48 = vmul.f32 %v1328_v44, %v1328_v44 }
 0x5e4   :  { %v1331_v49 = vadd.f32 %v1330_v48, %v1329_v47 }
 0x5e6   :  { %v1332_v50 = vrot.slane %v1331_v49, 4 }
 0x5e8   :  { %v1333_v51 = vadd.f32 %v1332_v50, %v1331_v49 }
 0x5ea   :  { %v1334_v52 = vrot.slane %v1333_v51, 2 }
 0x5ec   :  { %v1335_v53 = vadd.f32 %v1334_v52, %v1333_v51 }
 0x5ee   :  { %v1336_v54 = vrot.slane %v1335_v53, 1 }
 0x5f0   :  { %v1337_v55 = vadd.f32 %v1336_v54, %v1335_v53 }
 0x5f2   :  { %2300 = vmatmul.mubr.f32.vlgmr.msra.gmra.mxu1 %v1337_v55 }
 0x6b2   :  { %v1404_v56 = vpop.f32.mrf.mxu1 }
 0x6b3   :  { %v1408_v57 = vmul.f32 0.001953125, %v1404_v56 }
 0x6b4   :  { %v2301_v58 = vpop.f32.mrf.mxu1 }
 0x6b5   :  { %v1409_v59 = vadd.f32 1e-05, %v1408_v57 }
 0x6b7   :  { %2314 = vrsqrt.f32 %v1409_v59 }
 0x6c4   :  { %v2315_v60 = vpop.eup %2314 }
 0x6c5   :  { %v1412_v61 = vrot.slane %v2315_v60, 6 }
 0x6c7   :  { %v1414_v0 = vmul.f32 %v1412_v61, %v2596_v63 }
 0x6c9   :  { %v1418_v6 = vrot.slane %v1414_v0, %v1417_v4 }
 0x6cb   :  { %v1419_v9 = vmul.f32 %v1418_v6, %v1327_v41  ;;  %v1420_v10 = vmul.f32 %v1418_v6, %v1328_v44 }
 0x6cd   :  { %v1425_v13 = vadd.f32 %v1424_v7, %v1419_v9  ;;  %v1426_v2 = vadd.f32 %v1424_v7, %v1420_v10 }
 0x6cf   :  { %v1427_v15 = vadd.f32 %v2316_v14, %v1425_v13  ;;  %v1428_v17 = vadd.f32 %v2317_v16, %v1426_v2 }
 0x6d1   :  { %v1429_v19 = vmax.f32 %v1427_v15, 0.0  ;;  %v1430_v12 = vmax.f32 %v1428_v17, 0.0 }
 0x6d3   :  { %1431 = vst [vmem:[#allocation8] sm:$0xff] %v1429_v19  ;;  %1432 = vst [vmem:[#allocation8 + $0x8] sm:$0xff] %v1430_v12 }
 0x6d4   :  { %2389 = shalt.err (!%p2386_p5)
}
 0x6d5   :  { %1444 = dma.vmem_to_hbm [thread:$0]  %s1439_s7, 256, %s2700_s4, [#allocation4], %s2408_s25, %s2408_s25, %s2409_s26  }
 0x6d6   :  { %2402 = dma.done.wait [#allocation4], 256  }
 0x6d7   :  { %2403 = vsyncadd [#allocation4], 4294967040 }
 0x6d8   :  { %1448 = vsyncpa [#allocation3], 1 }
 0x6d9   :  { %1449 = vsyncpa [#allocation6], 1 }
 0x6da   :  { %1450 = vsyncpa [#allocation4], 1 }

</bundles_post_ra>
